<compile_context>
chip_gen: v6e
topology: v6e:2x2x1
jax: 0.10.0
libtpu: 0.0.40
codegen_flags: <defaults>
</compile_context>

<pallas_src>
import functools
import math

import jax
import jax.numpy as jnp
from jax.experimental import pallas as pl
from jax.experimental.pallas import tpu as pltpu


def _round_up(n, m):
    return ((n + m - 1) // m) * m


# ---------------------------------------------------------------------------
# Kernel: one batch tile = 3 chained MXU matmuls (bf16 operands, f32 accumulate
# and f32 elementwise). All widths are lane-dense (multiples of 128) by packing.
# ---------------------------------------------------------------------------
def _karank_kernel(xp_ref, w1_ref, b1_ref, w2_ref, b2_ref, wfc_ref, bfc_ref,
                   out_ref):
    x = xp_ref[...].astype(jnp.bfloat16)              # in-kernel cast (VPU, hidden)

    # conv1 (3x3 im2col folded into the Toeplitz weight) + bias + ReLU
    z1 = jnp.dot(x, w1_ref[...], preferred_element_type=jnp.float32)
    z1 = jnp.maximum(z1 + b1_ref[...], 0.0).astype(jnp.bfloat16)       # (TB, 512)

    # conv2: all 9 taps fused into one matmul (block-diagonal over depth) + bias + ReLU
    z2 = jnp.dot(z1, w2_ref[...], preferred_element_type=jnp.float32)
    z2 = jnp.maximum(z2 + b2_ref[...], 0.0).astype(jnp.bfloat16)       # (TB, 256)

    # fc1 and fc2 folded into one affine layer at pack time (no ReLU between them)
    out_ref[...] = (jnp.dot(z2, wfc_ref[...], preferred_element_type=jnp.float32)
                    + bfc_ref[...])                                    # (TB, 128)


# ---------------------------------------------------------------------------
# One-time weight packing (all reshuffles / folds hoisted out of the call path)
# ---------------------------------------------------------------------------
def _conv1_toeplitz(W1):
    """W1 (3C,3,3) -> (25, 9*3C): folds the 3x3 im2col of a 5x5 patch into the weight.

    Column layout: pos*3C + cout with pos = oh*3 + ow (conv1 output position);
    row layout: ih*5 + iw (flattened 5x5 input patch).
    """
    cout = W1.shape[0]
    t = jnp.zeros((25, 9, cout), jnp.float32)
    for oh in range(3):
        for ow in range(3):
            pos = oh * 3 + ow
            for kh in range(3):
                for kw in range(3):
                    t = t.at[(oh + kh) * 5 + (ow + kw), pos, :].set(W1[:, kh, kw])
    return t.reshape(25, 9 * cout)


def _block_diag(w, C):
    """(K, N) -> (C*K, C*N) block-diagonal replication over the depth axis."""
    K, N = w.shape
    eye = jnp.eye(C, dtype=w.dtype)
    return jnp.einsum("de,kn->dken", eye, w).reshape(C * K, C * N)


def pack_params(params):
    """Kernel-ready weights: bf16 matrices + f32 bias rows, all widths padded to 128.

    Returns (w1, b1, w2, b2, wfc, bfc).  Call once per model.
    """
    W1, b1, W2, b2, Wf1, bf1, Wf2, bf2 = params
    C = W1.shape[0] // 3
    n_classes = Wf2.shape[0]

    # conv1: (C*25) -> n1 = C*27C, columns d*27C + pos*3C + cout ; pad N to 128 multiple
    w1 = _block_diag(_conv1_toeplitz(W1), C)                           # (C*25, n1)
    b1r = jnp.tile(b1, 9 * C)[None, :]
    n1 = w1.shape[1]
    N1 = _round_up(n1, 128)
    w1p = (jnp.zeros((w1.shape[0], N1), jnp.float32).at[:, :n1].set(w1)
           .astype(jnp.bfloat16))
    b1p = jnp.zeros((1, N1), jnp.float32).at[:, :n1].set(b1r)

    # conv2: n1 -> n2 = C*9C, columns d*9C + o ;  W2cat[pos*3C+cin, o] = W2[o,cin,kh,kw]
    w2cat = W2.transpose(2, 3, 1, 0).reshape(27 * C, 9 * C)
    w2 = _block_diag(w2cat, C)                                         # (n1, n2)
    b2r = jnp.tile(b2, C)[None, :]
    n2 = w2.shape[1]
    N2 = _round_up(n2, 128)
    w2p = (jnp.zeros((N1, N2), jnp.float32).at[:n1, :n2].set(w2)
           .astype(jnp.bfloat16))
    b2p = jnp.zeros((1, N2), jnp.float32).at[:, :n2].set(b2r)

    # fc1 ∘ fc2 folded in f32 (no nonlinearity between them).  Torch flatten order of
    # the conv2 output is (cout, d); our z2 columns are (d, cout) -> reorder Wf1 rows.
    wf1 = (Wf1.reshape(6 * C, 9 * C, C).transpose(2, 1, 0)
           .reshape(9 * C * C, 6 * C))                                 # rows: d*9C + o
    wfold = wf1 @ Wf2.T                                                # (n2, n_classes) f32
    bfold = bf1 @ Wf2.T + bf2                                          # (n_classes,)
    NO = _round_up(n_classes, 128)
    wfp = (jnp.zeros((N2, NO), jnp.float32).at[:n2, :n_classes].set(wfold)
           .astype(jnp.bfloat16))
    bfp = jnp.zeros((1, NO), jnp.float32).at[0, :n_classes].set(bfold)

    return (w1p, b1p, w2p, b2p, wfp, bfp)


# ---------------------------------------------------------------------------
# Forward wrapper: 1-D parallel batch grid + VMEM-resident weights
# ---------------------------------------------------------------------------
def karank_forward(x, packed, n_classes, *, batch_tile=1024):
    """x: (B, 1, C, P, P) float32 (torch NCDHW layout).  packed: pack_params(params)."""
    w1, b1, w2, b2, wfc, bfc = packed
    B, one, C, P, P2 = x.shape
    assert one == 1 and P2 == P
    assert P == 5, "patch_size must be 5 so conv2 output spatial is 1x1"
    feat_in = C * P * P
    NO = wfc.shape[1]                         # lane-padded class width (multiple of 128)

    xp = x.reshape(B, feat_in)                # f32; no host-side cast or pad

    # Batch tile: multiple of 16 rows (bf16 sublane packing), capped so the parallel
    # batch grid has >=2 steps when B allows (keeps both v7x TensorCores busy).
    TB = min(batch_tile, _round_up(pl.cdiv(B, 2), 16))
    assert TB % 16 == 0
    grid = pl.cdiv(B, TB)                     # partial last block: OOB rows masked on store

    # Weights/biases mapped to block (0,0) on every step -> stay VMEM-resident.
    resident_specs = [pl.BlockSpec(a.shape, lambda i: (0, 0)) for a in packed]
    # TODO(synk): pipeline_mode=pl.Buffered(1) on the resident specs would drop their
    # unused second buffer (~0.25 MB); skipped as negligible at these sizes.

    flops = 2 * B * (w1.shape[0] * w1.shape[1] + w2.shape[0] * w2.shape[1]
                     + wfc.shape[0] * wfc.shape[1])
    bytes_accessed = (xp.size * xp.dtype.itemsize
                      + sum(int(a.size) * a.dtype.itemsize for a in packed)
                      + B * NO * 4)

    out = pl.pallas_call(
        _karank_kernel,
        out_shape=jax.ShapeDtypeStruct((B, NO), jnp.float32),
        grid=(grid,),
        in_specs=[pl.BlockSpec((TB, feat_in), lambda i: (i, 0))] + resident_specs,
        out_specs=pl.BlockSpec((TB, NO), lambda i: (i, 0)),
        compiler_params=pltpu.CompilerParams(dimension_semantics=("parallel",)),
        cost_estimate=pl.CostEstimate(flops=int(flops), transcendentals=0,
                                      bytes_accessed=int(bytes_accessed)),
    )(xp, *packed)
    return out[:, :n_classes]


# ---------------------------------------------------------------------------
# Pure-JAX reference (exact PyTorch semantics, f32) and param init
# ---------------------------------------------------------------------------
def ref_forward(x, params):
    W1, b1, W2, b2, Wf1, bf1, Wf2, bf2 = params
    B, _, C, P, _ = x.shape
    OH = P - 2
    xs = x[:, 0]
    win = jnp.stack(
        [jnp.stack([xs[:, :, kh:kh + OH, kw:kw + OH] for kw in range(3)], axis=-1)
         for kh in range(3)], axis=-2)              # (B, C, OH, OW, kh, kw)
    z1 = jnp.einsum("bdhwij,cij->bcdhw", win, W1) + b1[None, :, None, None, None]
    z1 = jnp.maximum(z1, 0.0)                       # (B, 3C, C, 3, 3)
    z2 = jnp.einsum("bidhw,oihw->bod", z1, W2) + b2[None, :, None]
    z2 = jnp.maximum(z2, 0.0)                       # (B, 9C, C)
    f = z2.reshape(B, -1)                           # torch flatten order (cout, d)
    h = f @ Wf1.T + bf1
    return h @ Wf2.T + bf2


def make_params(key, C, n_classes):
    keys = jax.random.split(key, 8)
    feat = 9 * C * C

    def u(k, shape, fan_in):
        bound = 1.0 / math.sqrt(fan_in)
        return jax.random.uniform(k, shape, jnp.float32, -bound, bound)

    W1 = u(keys[0], (3 * C, 3, 3), 9)                       # conv1.weight (squeezed)
    b1 = u(keys[1], (3 * C,), 9)
    W2 = u(keys[2], (9 * C, 3 * C, 3, 3), 3 * C * 9)        # conv2.weight (squeezed)
    b2 = u(keys[3], (9 * C,), 3 * C * 9)
    Wf1 = u(keys[4], (6 * C, feat), feat)
    bf1 = u(keys[5], (6 * C,), feat)
    Wf2 = u(keys[6], (n_classes, 6 * C), 6 * C)
    bf2 = u(keys[7], (n_classes,), 6 * C)
    return (W1, b1, W2, b2, Wf1, bf1, Wf2, bf2)


if __name__ == "__main__":
    B, C, P, n_classes = 2, 4, 5, 10
    key = jax.random.PRNGKey(0)
    pkey, xkey, xkey2 = jax.random.split(key, 3)
    params = make_params(pkey, C, n_classes)
    packed = pack_params(params)

    fwd = jax.jit(functools.partial(karank_forward, n_classes=n_classes))

    # Small demo batch (single grid step, partial block masked by Pallas).
    x = jax.random.normal(xkey, (B, 1, C, P, P), jnp.float32)
    out = jax.block_until_ready(fwd(x, packed))
    ref = ref_forward(x, params)
    assert out.shape == (B, n_classes), out.shape
    err = float(jnp.max(jnp.abs(out - ref)))
    assert jnp.allclose(out, ref, atol=2e-2, rtol=2e-2), f"max abs err {err}"

    # Larger batch exercising the 2-step batch grid + partial last block path.
    B2 = 300
    x2 = jax.random.normal(xkey2, (B2, 1, C, P, P), jnp.float32)
    out2 = jax.block_until_ready(fwd(x2, packed))
    ref2 = ref_forward(x2, params)
    assert out2.shape == (B2, n_classes), out2.shape
    err2 = float(jnp.max(jnp.abs(out2 - ref2)))
    assert jnp.allclose(out2, ref2, atol=2e-2, rtol=2e-2), f"max abs err {err2}"

    print("KERNEL_OK")
</pallas_src>

<mosaic_0001>
module attributes {stable_mosaic.version = 11 : i64} {
  func.func @_karank_kernel(%arg0: i32, %arg1: memref<16x100xf32, #tpu.memory_space<vmem>>, %arg2: memref<100x512xbf16, #tpu.memory_space<vmem>>, %arg3: memref<1x512xf32, #tpu.memory_space<vmem>>, %arg4: memref<512x256xbf16, #tpu.memory_space<vmem>>, %arg5: memref<1x256xf32, #tpu.memory_space<vmem>>, %arg6: memref<256x128xbf16, #tpu.memory_space<vmem>>, %arg7: memref<1x128xf32, #tpu.memory_space<vmem>>, %arg8: memref<16x128xf32, #tpu.memory_space<vmem>>) attributes {dimension_semantics = [#tpu.dimension_semantics<parallel>], iteration_bounds = array<i64: 1>, scalar_prefetch = 0 : i64, scratch_operands = 0 : i64, tpu.core_type = #tpu.core_type<tc>, window_params = [{transform_indices = @transform_0, window_bounds = array<i64: 16, 100>}, {pipeline_mode = #tpu.pipeline_mode<synchronous>, transform_indices = @transform_1, window_bounds = array<i64: 100, 512>}, {pipeline_mode = #tpu.pipeline_mode<synchronous>, transform_indices = @transform_2, window_bounds = array<i64: 1, 512>}, {pipeline_mode = #tpu.pipeline_mode<synchronous>, transform_indices = @transform_3, window_bounds = array<i64: 512, 256>}, {pipeline_mode = #tpu.pipeline_mode<synchronous>, transform_indices = @transform_4, window_bounds = array<i64: 1, 256>}, {pipeline_mode = #tpu.pipeline_mode<synchronous>, transform_indices = @transform_5, window_bounds = array<i64: 256, 128>}, {pipeline_mode = #tpu.pipeline_mode<synchronous>, transform_indices = @transform_6, window_bounds = array<i64: 1, 128>}, {transform_indices = @transform_7, window_bounds = array<i64: 16, 128>}]} {
    %c0 = arith.constant 0 : index
    %c0_0 = arith.constant 0 : index
    %0 = vector.load %arg1[%c0, %c0_0] : memref<16x100xf32, #tpu.memory_space<vmem>>, vector<16x100xf32>
    %1 = arith.truncf %0 : vector<16x100xf32> to vector<16x100xbf16>
    %c0_1 = arith.constant 0 : index
    %c0_2 = arith.constant 0 : index
    %2 = vector.load %arg2[%c0_1, %c0_2] : memref<100x512xbf16, #tpu.memory_space<vmem>>, vector<100x512xbf16>
    %cst = arith.constant dense<0.000000e+00> : vector<16x512xf32>
    %3 = tpu.matmul %1, %2, %cst {dimension_numbers = #tpu.dot_dimension_numbers<[1], [0], [0], [1], [0, 0, 1, 1], [], []>} : vector<16x100xbf16>, vector<100x512xbf16>, vector<16x512xf32> -> vector<16x512xf32>
    %c0_3 = arith.constant 0 : index
    %c0_4 = arith.constant 0 : index
    %4 = vector.load %arg3[%c0_3, %c0_4] : memref<1x512xf32, #tpu.memory_space<vmem>>, vector<1x512xf32>
    %5 = vector.broadcast %4 : vector<1x512xf32> to vector<16x512xf32>
    %6 = arith.addf %3, %5 : vector<16x512xf32>
    %cst_5 = arith.constant 0.000000e+00 : f32
    %7 = vector.broadcast %cst_5 : f32 to vector<16x512xf32>
    %8 = arith.maximumf %6, %7 : vector<16x512xf32>
    %9 = arith.truncf %8 : vector<16x512xf32> to vector<16x512xbf16>
    %c0_6 = arith.constant 0 : index
    %c0_7 = arith.constant 0 : index
    %10 = vector.load %arg4[%c0_6, %c0_7] : memref<512x256xbf16, #tpu.memory_space<vmem>>, vector<512x256xbf16>
    %cst_8 = arith.constant dense<0.000000e+00> : vector<16x256xf32>
    %11 = tpu.matmul %9, %10, %cst_8 {dimension_numbers = #tpu.dot_dimension_numbers<[1], [0], [0], [1], [0, 0, 1, 1], [], []>} : vector<16x512xbf16>, vector<512x256xbf16>, vector<16x256xf32> -> vector<16x256xf32>
    %c0_9 = arith.constant 0 : index
    %c0_10 = arith.constant 0 : index
    %12 = vector.load %arg5[%c0_9, %c0_10] : memref<1x256xf32, #tpu.memory_space<vmem>>, vector<1x256xf32>
    %13 = vector.broadcast %12 : vector<1x256xf32> to vector<16x256xf32>
    %14 = arith.addf %11, %13 : vector<16x256xf32>
    %cst_11 = arith.constant 0.000000e+00 : f32
    %15 = vector.broadcast %cst_11 : f32 to vector<16x256xf32>
    %16 = arith.maximumf %14, %15 : vector<16x256xf32>
    %17 = arith.truncf %16 : vector<16x256xf32> to vector<16x256xbf16>
    %c0_12 = arith.constant 0 : index
    %c0_13 = arith.constant 0 : index
    %18 = vector.load %arg6[%c0_12, %c0_13] : memref<256x128xbf16, #tpu.memory_space<vmem>>, vector<256x128xbf16>
    %cst_14 = arith.constant dense<0.000000e+00> : vector<16x128xf32>
    %19 = tpu.matmul %17, %18, %cst_14 {dimension_numbers = #tpu.dot_dimension_numbers<[1], [0], [0], [1], [0, 0, 1, 1], [], []>} : vector<16x256xbf16>, vector<256x128xbf16>, vector<16x128xf32> -> vector<16x128xf32>
    %c0_15 = arith.constant 0 : index
    %c0_16 = arith.constant 0 : index
    %20 = vector.load %arg7[%c0_15, %c0_16] : memref<1x128xf32, #tpu.memory_space<vmem>>, vector<1x128xf32>
    %21 = vector.broadcast %20 : vector<1x128xf32> to vector<16x128xf32>
    %22 = arith.addf %19, %21 : vector<16x128xf32>
    %c0_17 = arith.constant 0 : index
    %c0_18 = arith.constant 0 : index
    %23 = vector.load %arg8[%c0_17, %c0_18] : memref<16x128xf32, #tpu.memory_space<vmem>>, vector<16x128xf32>
    tpu.vector_store %arg8[%c0_17, %c0_18], %22 {strides = array<i32>} : memref<16x128xf32, #tpu.memory_space<vmem>>, vector<16x128xf32>,
    return
  }
  func.func @transform_0(%arg0: i32) -> (i32, i32) {
    %c0_i32 = arith.constant 0 : i32
    %c0_i32_0 = arith.constant 0 : i32
    return %arg0, %c0_i32 : i32, i32
  }
  func.func @transform_1(%arg0: i32) -> (i32, i32) {
    %c0_i32 = arith.constant 0 : i32
    %c0_i32_0 = arith.constant 0 : i32
    %c0_i32_1 = arith.constant 0 : i32
    return %c0_i32, %c0_i32_0 : i32, i32
  }
  func.func @transform_2(%arg0: i32) -> (i32, i32) {
    %c0_i32 = arith.constant 0 : i32
    %c0_i32_0 = arith.constant 0 : i32
    %c0_i32_1 = arith.constant 0 : i32
    return %c0_i32, %c0_i32_0 : i32, i32
  }
  func.func @transform_3(%arg0: i32) -> (i32, i32) {
    %c0_i32 = arith.constant 0 : i32
    %c0_i32_0 = arith.constant 0 : i32
    %c0_i32_1 = arith.constant 0 : i32
    return %c0_i32, %c0_i32_0 : i32, i32
  }
  func.func @transform_4(%arg0: i32) -> (i32, i32) {
    %c0_i32 = arith.constant 0 : i32
    %c0_i32_0 = arith.constant 0 : i32
    %c0_i32_1 = arith.constant 0 : i32
    return %c0_i32, %c0_i32_0 : i32, i32
  }
  func.func @transform_5(%arg0: i32) -> (i32, i32) {
    %c0_i32 = arith.constant 0 : i32
    %c0_i32_0 = arith.constant 0 : i32
    %c0_i32_1 = arith.constant 0 : i32
    return %c0_i32, %c0_i32_0 : i32, i32
  }
  func.func @transform_6(%arg0: i32) -> (i32, i32) {
    %c0_i32 = arith.constant 0 : i32
    %c0_i32_0 = arith.constant 0 : i32
    %c0_i32_1 = arith.constant 0 : i32
    return %c0_i32, %c0_i32_0 : i32, i32
  }
  func.func @transform_7(%arg0: i32) -> (i32, i32) {
    %c0_i32 = arith.constant 0 : i32
    %c0_i32_0 = arith.constant 0 : i32
    return %arg0, %c0_i32 : i32, i32
  }
}

</mosaic_0001>

<bundles_post_ra>
// kernel: karank_forward.1
= control target key start
LH: loop header
LB: loop body
LE: loop exit
PB: predicated region body
PF: predicated region fallthrough
CT: control target
= control target key end

     0   :  { %12 = vsyncpa [#allocation3], 0  ;;  %s1545_s0 = inlined_call_operand.vmem [shape: f32[2,100], index: 0, kind: input, shape index: {}]   ;;  %s1546_s1 = inlined_call_operand.hbm [shape: bf16[100,512], index: 1, kind: input, shape index: {}]   ;;  %s1547_s2 = inlined_call_operand.vmem [shape: f32[1,512], index: 2, kind: input, shape index: {}]   ;;  %s1548_s3 = inlined_call_operand.hbm [shape: bf16[512,256], index: 3, kind: input, shape index: {}]   ;;  %s1549_s4 = inlined_call_operand.vmem [shape: f32[1,256], index: 4, kind: input, shape index: {}]   ;;  %s1550_s5 = inlined_call_operand.vmem [shape: bf16[256,128], index: 5, kind: input, shape index: {}]   ;;  %s1551_s6 = inlined_call_operand.vmem [shape: f32[1,128], index: 6, kind: input, shape index: {}]   ;;  %s1552_s7 = inlined_call_operand.hbm [shape: f32[2,128], index: 7, kind: output, shape index: {}]  }
   0x1   :  { %13 = vsyncpa [#allocation6], 0 }
   0x2   :  { %14 = vsyncpa [#allocation4], 0  ;;  %s1399_s24 = smov [#allocation2]  }
   0x3   :  { %s22_s25 = sshll.u32 %s1399_s24, 4  ;;  %s23_s25 = int_to_ptr.vmem [resolvable:$true] %s22_s25 }
   0x4   :  { %s1341_s26 = scalar_lea.vmem %s23_s25, 3328  ;;  %p1346_p1 = scmp.lt.s32.totalorder %s23_s25, %s23_s25 }
   0x5   :  { %p1342_p0 = scmp.ne.s32.totalorder %s23_s25, %s1341_s26  ;;  %p1347_p2 = scmp.lt.s32.totalorder %s1341_s26, %s1341_s26 }
   0x7   :  { %p1348_p3 = por %p1347_p2, %p1346_p1 }
   0x9   :  { %p1349_p4 = pnand %p1348_p3, %p1342_p0 }
   0xb   :  { %1352 = shalt.err (!%p1349_p4)
}
   0xc   :  { %s1400_s27 = smov 256   ;;  %s1401_s28 = smov 16  }
   0xd   :  { %28 = dma.hbm_to_vmem [thread:$0]  %s1546_s1, 3328, %s23_s25, [#allocation3], %s1400_s27, %s1400_s27, %s1401_s28  }
   0xe   :  { %s1402_s8 = smov [#allocation5]  }
   0xf   :  { %s36_s9 = sshll.u32 %s1402_s8, 4  ;;  %s37_s9 = int_to_ptr.vmem [resolvable:$true] %s36_s9 }
  0x10   :  { %s1361_s10 = scalar_lea.vmem %s37_s9, 8192  ;;  %p1366_p6 = scmp.lt.s32.totalorder %s37_s9, %s37_s9 }
  0x11   :  { %p1362_p5 = scmp.ne.s32.totalorder %s37_s9, %s1361_s10  ;;  %p1367_p7 = scmp.lt.s32.totalorder %s1361_s10, %s1361_s10 }
  0x13   :  { %p1368_p8 = por %p1367_p7, %p1366_p6 }
  0x15   :  { %p1369_p9 = pnand %p1368_p8, %p1362_p5 }
  0x17   :  { %1372 = shalt.err (!%p1369_p9)
}
  0x18   :  { %s1403_s11 = smov 128   ;;  %s1404_s12 = smov 8  }
  0x19   :  { %42 = dma.hbm_to_vmem [thread:$0]  %s1548_s3, 8192, %s37_s9, [#allocation6], %s1403_s11, %s1403_s11, %s1404_s12  }
  0x1a   :  { %1393 = dma.done.wait [#allocation3], 3328  }
  0x1b   :  { %1394 = vsyncadd [#allocation3], 4294963968 }
  0x1c   :  { %1395 = dma.done.wait [#allocation6], 8192  }
  0x1d   :  { %1396 = vsyncadd [#allocation6], 4294959104  ;;  %v1405_v0 = vmov 0   ;;  %v83_v1 = vld [vmem:[#allocation2 + $0xc0] sm:$0x33]  ;;  %vm241_vm0 = vcmask 1041408  }
  0x1e   :  { %286 = vmatprep.mubr.bf16.mxu1 %v1405_v0  ;;  %v1061_v2 = vcombine.high %v83_v1, %v83_v1  ;;  %v1060_v3 = vcombine.low %v83_v1, %v83_v1  ;;  %v1183_v4 = vld [vmem:[#allocation2 + $0xa4] ss:$16 sps:$4 sm:$0xff]   ;;  %v1185_v6 = vld [vmem:[#allocation2 + $0xa0] ss:$16 sps:$4 sm:$0xff]   ;;  %v84_v20 = vld [vmem:[#allocation2 + $0xc8] sm:$0x33] }
  0x1f   :  { %v1186_v7 = vld [vmem:[#allocation2 + $0x84] ss:$16 sps:$4 sm:$0xff]   ;;  %v1188_v8 = vld [vmem:[#allocation2 + $0x80] ss:$16 sps:$4 sm:$0xff]   ;;  %v57_v24 = vld [vmem:[%s1545_s0 + $0x8] sm:$0xff]  ;;  %v1063_v25 = vcombine.high %v84_v20, %v84_v20  ;;  %v1062_v26 = vcombine.low %v84_v20, %v84_v20  ;;  %vm237_vm1 = vcmask 818176  }
  0x20   :  { %1064 = vmatprep.subr.msk.bf16.mxu1 %vm241_vm0, %v1061_v2  ;;  %v243_v5 = vsel %vm241_vm0, %v1060_v3, 0  ;;  %v1189_v9 = vld [vmem:[#allocation2 + $0x64] ss:$16 sps:$4 sm:$0xff]   ;;  %v1191_v10 = vld [vmem:[#allocation2 + $0x60] ss:$16 sps:$4 sm:$0xff]  }
  0x21   :  { %257 = vmatpush1.bf16.msra.mxu1 %v243_v5  ;;  %v1192_v11 = vld [vmem:[#allocation2 + $0x44] ss:$16 sps:$4 sm:$0xff]   ;;  %v1194_v12 = vld [vmem:[#allocation2 + $0x40] ss:$16 sps:$4 sm:$0xff]   ;;  %v1205_v30 = vld [vmem:[#allocation2 + $0xac] ss:$16 sps:$4 sm:$0xff]  }
  0x22   :  { %258 = vmatprep.subr.bf16.mxu1 %v1183_v4  ;;  %v1195_v13 = vld [vmem:[#allocation2 + $0x24] ss:$16 sps:$4 sm:$0xff]   ;;  %v1223_v15 = vld [vmem:[#allocation5 + $0x70] ss:$8 sps:$4 sm:$0xff]   ;;  %v1226_v19 = vld [vmem:[#allocation5 + $0x60] ss:$8 sps:$4 sm:$0xff]  }
  0x23   :  { %v1221_v14 = vld [vmem:[#allocation5 + $0x74] ss:$8 sps:$4 sm:$0xff]   ;;  %v1197_v16 = vld [vmem:[#allocation2 + $0x20] ss:$16 sps:$4 sm:$0xff]   ;;  %v1224_v17 = vld [vmem:[#allocation5 + $0x64] ss:$8 sps:$4 sm:$0xff]  }
  0x24   :  { %v1198_v18 = vld [vmem:[#allocation2 + $0x4] ss:$16 sps:$4 sm:$0xff]   ;;  %748 = vmatprep.subr.bf16.mxu0 %v1221_v14  ;;  %v1200_v22 = vld [vmem:[#allocation2] ss:$16 sps:$4 sm:$0xff]   ;;  %v249_v31 = vsel %vm241_vm0, %v1062_v26, 0 }
  0x25   :  { %259 = vmatpush1.bf16.msra.mxu1 %v1185_v6  ;;  %749 = vmatpush1.bf16.msra.mxu0 %v1223_v15  ;;  %v1227_v21 = vld [vmem:[#allocation5 + $0x54] ss:$8 sps:$4 sm:$0xff]   ;;  %v1229_v27 = vld [vmem:[#allocation5 + $0x50] ss:$8 sps:$4 sm:$0xff]   ;;  %v1230_v28 = vld [vmem:[#allocation5 + $0x44] ss:$8 sps:$4 sm:$0xff]  }
  0x26   :  { %260 = vmatprep.subr.bf16.mxu1 %v1186_v7  ;;  %750 = vmatprep.subr.bf16.mxu0 %v1224_v17  ;;  %v56_v23 = vld [vmem:[%s1545_s0] sm:$0xff]  ;;  %v1232_v32 = vld [vmem:[#allocation5 + $0x40] ss:$8 sps:$4 sm:$0xff]   ;;  %v1208_v35 = vld [vmem:[#allocation2 + $0x8c] ss:$16 sps:$4 sm:$0xff]  }
  0x27   :  { %v1463_v29 = vpack.c.bf16 %v57_v24, %v56_v23  ;;  %v1233_v33 = vld [vmem:[#allocation5 + $0x34] ss:$8 sps:$4 sm:$0xff]   ;;  %v1203_v34 = vld [vmem:[#allocation2 + $0xa8] ss:$16 sps:$4 sm:$0xff]   ;;  %v1236_v37 = vld [vmem:[#allocation5 + $0x24] ss:$8 sps:$4 sm:$0xff]  }
  0x28   :  { %v1235_v36 = vld [vmem:[#allocation5 + $0x30] ss:$8 sps:$4 sm:$0xff]   ;;  %v1211_v39 = vld [vmem:[#allocation2 + $0x6c] ss:$16 sps:$4 sm:$0xff]   ;;  %v1238_v40 = vld [vmem:[#allocation5 + $0x20] ss:$8 sps:$4 sm:$0xff]  }
  0x29   :  { %261 = vmatpush1.bf16.msra.mxu1 %v1188_v8  ;;  %751 = vmatpush1.bf16.msra.mxu0 %v1226_v19  ;;  %v1206_v38 = vld [vmem:[#allocation2 + $0x88] ss:$16 sps:$4 sm:$0xff]   ;;  %v1239_v41 = vld [vmem:[#allocation5 + $0x14] ss:$8 sps:$4 sm:$0xff]   ;;  %v1242_v46 = vld [vmem:[#allocation5 + $0x4] ss:$8 sps:$4 sm:$0xff]  }
  0x2a   :  { %262 = vmatprep.subr.bf16.mxu1 %v1189_v9  ;;  %752 = vmatprep.subr.bf16.mxu0 %v1227_v21  ;;  %v1209_v42 = vld [vmem:[#allocation2 + $0x68] ss:$16 sps:$4 sm:$0xff]   ;;  %v1214_v43 = vld [vmem:[#allocation2 + $0x4c] ss:$16 sps:$4 sm:$0xff]  }
  0x2b   :  { %v1241_v44 = vld [vmem:[#allocation5 + $0x10] ss:$8 sps:$4 sm:$0xff]   ;;  %v1217_v47 = vld [vmem:[#allocation2 + $0x2c] ss:$16 sps:$4 sm:$0xff]   ;;  %v1247_v48 = vld [vmem:[#allocation5] ss:$8 sps:$4 sm:$0xff]  }
  0x2c   :  { %v1212_v45 = vld [vmem:[#allocation2 + $0x48] ss:$16 sps:$4 sm:$0xff]   ;;  %v1248_v49 = vld [vmem:[#allocation5 + $0xf4] ss:$8 sps:$4 sm:$0xff]   ;;  %v1254_v53 = vld [vmem:[#allocation5 + $0xe4] ss:$8 sps:$4 sm:$0xff]  }
  0x2d   :  { %263 = vmatpush1.bf16.msra.mxu1 %v1191_v10  ;;  %753 = vmatpush1.bf16.msra.mxu0 %v1229_v27  ;;  %v1215_v50 = vld [vmem:[#allocation2 + $0x28] ss:$16 sps:$4 sm:$0xff]   ;;  %v1220_v51 = vld [vmem:[#allocation2 + $0xc] ss:$16 sps:$4 sm:$0xff]  }
  0x2e   :  { %264 = vmatprep.subr.bf16.mxu1 %v1192_v11  ;;  %754 = vmatprep.subr.bf16.mxu0 %v1230_v28  ;;  %v1253_v52 = vld [vmem:[#allocation5 + $0xf0] ss:$8 sps:$4 sm:$0xff]   ;;  %v1246_v55 = vld [vmem:[#allocation5 + $0x174] ss:$8 sps:$4 sm:$0xff]   ;;  %v1259_v56 = vld [vmem:[#allocation5 + $0xe0] ss:$8 sps:$4 sm:$0xff]  }
  0x2f   :  { %v1218_v54 = vld [vmem:[#allocation2 + $0x8] ss:$16 sps:$4 sm:$0xff]   ;;  %v1260_v57 = vld [vmem:[#allocation5 + $0xd4] ss:$8 sps:$4 sm:$0xff]   ;;  %v1252_v59 = vld [vmem:[#allocation5 + $0x164] ss:$8 sps:$4 sm:$0xff]  }
  0x30   :  { %v1244_v58 = vld [vmem:[#allocation5 + $0x170] ss:$8 sps:$4 sm:$0xff]   ;;  %v1266_v61 = vld [vmem:[#allocation5 + $0xc4] ss:$8 sps:$4 sm:$0xff]   ;;  %v1250_v62 = vld [vmem:[#allocation5 + $0x160] ss:$8 sps:$4 sm:$0xff]  }
  0x31   :  { %265 = vmatpush1.bf16.msra.mxu1 %v1194_v12  ;;  %755 = vmatpush1.bf16.msra.mxu0 %v1232_v32  ;;  %v1265_v60 = vld [vmem:[#allocation5 + $0xd0] ss:$8 sps:$4 sm:$0xff]   ;;  %v1258_v63 = vld [vmem:[#allocation5 + $0x154] ss:$8 sps:$4 sm:$0xff]   ;;  %v1264_v3 = vld [vmem:[#allocation5 + $0x144] ss:$8 sps:$4 sm:$0xff]  }
  0x32   :  { %266 = vmatprep.subr.bf16.mxu1 %v1195_v13  ;;  %756 = vmatprep.subr.bf16.mxu0 %v1233_v33  ;;  %v1272_v1 = vld [vmem:[#allocation5 + $0xb4] ss:$8 sps:$4 sm:$0xff]   ;;  %v1256_v2 = vld [vmem:[#allocation5 + $0x150] ss:$8 sps:$4 sm:$0xff]   ;;  %v1262_v5 = vld [vmem:[#allocation5 + $0x140] ss:$8 sps:$4 sm:$0xff]  }
  0x33   :  { %v1277_v4 = vld [vmem:[#allocation5 + $0xb0] ss:$8 sps:$4 sm:$0xff]   ;;  %v1270_v6 = vld [vmem:[#allocation5 + $0x134] ss:$8 sps:$4 sm:$0xff]   ;;  %v1276_v8 = vld [vmem:[#allocation5 + $0x124] ss:$8 sps:$4 sm:$0xff]  }
  0x34   :  { %v1268_v7 = vld [vmem:[#allocation5 + $0x130] ss:$8 sps:$4 sm:$0xff]   ;;  %v1274_v9 = vld [vmem:[#allocation5 + $0x120] ss:$8 sps:$4 sm:$0xff]   ;;  %v1278_v10 = vld [vmem:[#allocation5 + $0xa4] ss:$8 sps:$4 sm:$0xff]  }
  0x35   :  { %267 = vmatpush1.bf16.msra.mxu1 %v1197_v16  ;;  %757 = vmatpush1.bf16.msra.mxu0 %v1235_v36  ;;  %v1282_v11 = vld [vmem:[#allocation5 + $0x114] ss:$8 sps:$4 sm:$0xff]   ;;  %v1280_v12 = vld [vmem:[#allocation5 + $0x110] ss:$8 sps:$4 sm:$0xff]   ;;  %v1283_v13 = vld [vmem:[#allocation5 + $0xa0] ss:$8 sps:$4 sm:$0xff]   ;;  %v87_v36 = vlaneseq }
  0x36   :  { %268 = vmatprep.subr.bf16.mxu1 %v1198_v18  ;;  %758 = vmatprep.subr.bf16.mxu0 %v1236_v37  ;;  %v1284_v14 = vld [vmem:[#allocation5 + $0x94] ss:$8 sps:$4 sm:$0xff]   ;;  %v1288_v15 = vld [vmem:[#allocation5 + $0x104] ss:$8 sps:$4 sm:$0xff]   ;;  %v1286_v16 = vld [vmem:[#allocation5 + $0x100] ss:$8 sps:$4 sm:$0xff]  }
  0x37   :  { %v1289_v17 = vld [vmem:[#allocation5 + $0x90] ss:$8 sps:$4 sm:$0xff]   ;;  %v1290_v18 = vld [vmem:[#allocation5 + $0x84] ss:$8 sps:$4 sm:$0xff]   ;;  %v1294_v19 = vld [vmem:[#allocation5 + $0x1f4] ss:$8 sps:$4 sm:$0xff]  }
  0x38   :  { %v1292_v20 = vld [vmem:[#allocation5 + $0x1f0] ss:$8 sps:$4 sm:$0xff]   ;;  %v1295_v21 = vld [vmem:[#allocation5 + $0x80] ss:$8 sps:$4 sm:$0xff]   ;;  %v1301_v24 = vld [vmem:[#allocation5 + $0x1d4] ss:$8 sps:$4 sm:$0xff]  }
  0x39   :  { %269 = vmatpush1.bf16.msra.mxu1 %v1200_v22  ;;  %759 = vmatpush1.bf16.msra.mxu0 %v1238_v40  ;;  %v1298_v22 = vld [vmem:[#allocation5 + $0x1e4] ss:$8 sps:$4 sm:$0xff]   ;;  %v1296_v23 = vld [vmem:[#allocation5 + $0x1e0] ss:$8 sps:$4 sm:$0xff]   ;;  %v1307_v28 = vld [vmem:[#allocation5 + $0x1b4] ss:$8 sps:$4 sm:$0xff]  }
  0x3a   :  { %1066 = vmatprep.subr.msk.bf16.mxu1 %vm241_vm0, %v1063_v25  ;;  %760 = vmatprep.subr.bf16.mxu0 %v1239_v41  ;;  %v1299_v25 = vld [vmem:[#allocation5 + $0x1d0] ss:$8 sps:$4 sm:$0xff]   ;;  %v1304_v26 = vld [vmem:[#allocation5 + $0x1c4] ss:$8 sps:$4 sm:$0xff]   ;;  %v1302_v27 = vld [vmem:[#allocation5 + $0x1c0] ss:$8 sps:$4 sm:$0xff]  }
  0x3b   :  { %v1313_v32 = vld [vmem:[#allocation5 + $0x194] ss:$8 sps:$4 sm:$0xff]   ;;  %v1311_v33 = vld [vmem:[#allocation5 + $0x190] ss:$8 sps:$4 sm:$0xff]   ;;  %v1471_v37 = vshrl.u32 %v87_v36, 7 }
  0x3c   :  { %1065 = vmatmul.mubr.msk.bf16.vlgmr.msra.gmra.mxu1 %vm237_vm1, %v1463_v29 }
  0x3d   :  { %300 = vmatpush1.bf16.msra.mxu1 %v249_v31  ;;  %329 = vmatprep.mubr.bf16.mxu1 %v1405_v0  ;;  %v1271_v0 = vld [vmem:[#allocation5 + $0xc0] ss:$8 sps:$4 sm:$0xff]   ;;  %v89_v40 = vsub.s32 0, %v1471_v37 }
  0x3e   :  { %301 = vmatprep.subr.bf16.mxu1 %v1205_v30  ;;  %761 = vmatpush1.bf16.msra.mxu0 %v1241_v44  ;;  %v1310_v30 = vld [vmem:[#allocation5 + $0x1a4] ss:$8 sps:$4 sm:$0xff]   ;;  %v1308_v31 = vld [vmem:[#allocation5 + $0x1a0] ss:$8 sps:$4 sm:$0xff]  }
  0x3f   :  { %762 = vmatprep.subr.bf16.mxu0 %v1242_v46 }
  0x41   :  { %302 = vmatpush1.bf16.msra.mxu1 %v1203_v34  ;;  %v1316_v34 = vld [vmem:[#allocation5 + $0x184] ss:$8 sps:$4 sm:$0xff]  }
  0x42   :  { %303 = vmatprep.subr.bf16.mxu1 %v1208_v35  ;;  %763 = vmatpush1.bf16.msra.mxu0 %v1247_v48  ;;  %v1314_v35 = vld [vmem:[#allocation5 + $0x180] ss:$8 sps:$4 sm:$0xff]  }
  0x43   :  { %764 = vmatprep.subr.bf16.mxu0 %v1248_v49 }
  0x45   :  { %304 = vmatpush1.bf16.msra.mxu1 %v1206_v38  ;;  %v93_v38 = vsub.s32 1, %v1471_v37 }
  0x46   :  { %305 = vmatprep.subr.bf16.mxu1 %v1211_v39  ;;  %765 = vmatpush2.bf16.msra.mxu0 %v1253_v52  ;;  %v85_v39 = vld [vmem:[%s1547_s2] sm:$0xf] }
  0x47   :  { %766 = vmatprep.subr.bf16.mxu0 %v1254_v53 }
  0x49   :  { %306 = vmatpush1.bf16.msra.mxu1 %v1209_v42  ;;  %v94_v42 = vrot.slane %v85_v39, %v93_v38 }
  0x4a   :  { %307 = vmatprep.subr.bf16.mxu1 %v1214_v43  ;;  %767 = vmatpush2.bf16.msra.mxu0 %v1259_v56  ;;  %v90_v43 = vrot.slane %v85_v39, %v89_v40 }
  0x4b   :  { %768 = vmatprep.subr.bf16.mxu0 %v1260_v57  ;;  %v101_v57 = vsub.s32 3, %v1471_v37 }
  0x4d   :  { %308 = vmatpush1.bf16.msra.mxu1 %v1212_v45 }
  0x4e   :  { %309 = vmatprep.subr.bf16.mxu1 %v1217_v47  ;;  %769 = vmatpush2.bf16.msra.mxu0 %v1265_v60  ;;  %v102_v60 = vrot.slane %v85_v39, %v101_v57 }
  0x4f   :  { %770 = vmatprep.subr.bf16.mxu0 %v1266_v61 }
  0x51   :  { %310 = vmatpush1.bf16.msra.mxu1 %v1215_v50 }
  0x52   :  { %311 = vmatprep.subr.bf16.mxu1 %v1220_v51  ;;  %771 = vmatpush2.bf16.msra.mxu0 %v1271_v0 }
  0x53   :  { %772 = vmatprep.subr.bf16.mxu0 %v1272_v1 }
  0x55   :  { %312 = vmatpush1.bf16.msra.mxu1 %v1218_v54 }
  0x56   :  { %791 = vmatprep.subr.bf16.mxu1 %v1246_v55  ;;  %773 = vmatpush2.bf16.msra.mxu0 %v1277_v4 }
  0x57   :  { %774 = vmatprep.subr.bf16.mxu0 %v1278_v10 }
  0x58   :  { %1067 = vmatmul.mubr.msk.bf16.vlgmr.msra.gmra.mxu1 %vm237_vm1, %v1463_v29  ;;  %v1305_v29 = vld [vmem:[#allocation5 + $0x1b0] ss:$8 sps:$4 sm:$0xff]  }
  0x59   :  { %792 = vmatpush1.bf16.msra.mxu1 %v1244_v58  ;;  %v97_v58 = vsub.s32 2, %v1471_v37 }
  0x5a   :  { %793 = vmatprep.subr.bf16.mxu1 %v1252_v59  ;;  %775 = vmatpush2.bf16.msra.mxu0 %v1283_v13  ;;  %v1319_v13 = vld [vmem:[%s1550_s5 + $0x70] sm:$0xff]  }
  0x5b   :  { %776 = vmatprep.subr.bf16.mxu0 %v1284_v14  ;;  %v98_v61 = vrot.slane %v85_v39, %v97_v58  ;;  %v1320_v14 = vld [vmem:[%s1550_s5 + $0x30] sm:$0xff]  }
  0x5d   :  { %794 = vmatpush1.bf16.msra.mxu1 %v1250_v62 }
  0x5e   :  { %795 = vmatprep.subr.bf16.mxu1 %v1258_v63  ;;  %777 = vmatpush2.bf16.msra.mxu0 %v1289_v17  ;;  %v1323_v17 = vld [vmem:[%s1550_s5 + $0x60] sm:$0xff]  }
  0x5f   :  { %778 = vmatprep.subr.bf16.mxu0 %v1290_v18  ;;  %v1324_v18 = vld [vmem:[%s1550_s5 + $0x20] sm:$0xff]  }
  0x61   :  { %796 = vmatpush1.bf16.msra.mxu1 %v1256_v2 }
  0x62   :  { %797 = vmatprep.subr.bf16.mxu1 %v1264_v3  ;;  %779 = vmatpush2.bf16.msra.mxu0 %v1295_v21  ;;  %v1327_v21 = vld [vmem:[%s1550_s5 + $0x50] sm:$0xff]  }
  0x65   :  { %798 = vmatpush1.bf16.msra.mxu1 %v1262_v5 }
  0x66   :  { %799 = vmatprep.subr.bf16.mxu1 %v1270_v6 }
  0x69   :  { %800 = vmatpush1.bf16.msra.mxu1 %v1268_v7 }
  0x6a   :  { %801 = vmatprep.subr.bf16.mxu1 %v1276_v8 }
  0x6d   :  { %802 = vmatpush1.bf16.msra.mxu1 %v1274_v9 }
  0x6e   :  { %803 = vmatprep.subr.bf16.mxu1 %v1282_v11  ;;  %v1317_v11 = vld [vmem:[%s1550_s5 + $0x78] sm:$0xff]  }
  0x6f   :  { %1149 = vmatprep.subr.bf16.mxu0 %v1317_v11 }
  0x71   :  { %804 = vmatpush1.bf16.msra.mxu1 %v1280_v12  ;;  %v1318_v12 = vld [vmem:[%s1550_s5 + $0x38] sm:$0xff]  }
  0x72   :  { %805 = vmatprep.subr.bf16.mxu1 %v1288_v15  ;;  %v1321_v15 = vld [vmem:[%s1550_s5 + $0x68] sm:$0xff]  }
  0x75   :  { %806 = vmatpush1.bf16.msra.mxu1 %v1286_v16  ;;  %v1322_v16 = vld [vmem:[%s1550_s5 + $0x28] sm:$0xff]  }
  0x76   :  { %807 = vmatprep.subr.bf16.mxu1 %v1294_v19  ;;  %v1325_v19 = vld [vmem:[%s1550_s5 + $0x58] sm:$0xff]  }
  0x79   :  { %808 = vmatpush2.bf16.msra.mxu1 %v1292_v20  ;;  %v1326_v20 = vld [vmem:[%s1550_s5 + $0x18] sm:$0xff]  }
  0x7a   :  { %809 = vmatprep.subr.bf16.mxu1 %v1298_v22  ;;  %v1328_v22 = vld [vmem:[%s1550_s5 + $0x10] sm:$0xff]  }
  0x7d   :  { %810 = vmatpush2.bf16.msra.mxu1 %v1296_v23  ;;  %v1329_v23 = vld [vmem:[%s1550_s5 + $0x48] sm:$0xff]  }
  0x7e   :  { %811 = vmatprep.subr.bf16.mxu1 %v1301_v24  ;;  %v1330_v24 = vld [vmem:[%s1550_s5 + $0x8] sm:$0xff]  }
  0x81   :  { %812 = vmatpush2.bf16.msra.mxu1 %v1299_v25  ;;  %v1331_v25 = vld [vmem:[%s1550_s5 + $0x40] sm:$0xff]  }
  0x82   :  { %813 = vmatprep.subr.bf16.mxu1 %v1304_v26  ;;  %v1332_v26 = vld [vmem:[%s1550_s5] sm:$0xff]  }
  0x85   :  { %814 = vmatpush2.bf16.msra.mxu1 %v1302_v27 }
  0x86   :  { %815 = vmatprep.subr.bf16.mxu1 %v1307_v28 }
  0x89   :  { %816 = vmatpush2.bf16.msra.mxu1 %v1305_v29  ;;  %v416_v29 = vld [vmem:[%s1549_s4] sm:$0x3] }
  0x8a   :  { %817 = vmatprep.subr.bf16.mxu1 %v1310_v30 }
  0x8d   :  { %818 = vmatpush2.bf16.msra.mxu1 %v1308_v31  ;;  %v425_v31 = vrot.slane %v416_v29, %v93_v38 }
  0x8e   :  { %819 = vmatprep.subr.bf16.mxu1 %v1313_v32  ;;  %v421_v32 = vrot.slane %v416_v29, %v89_v40 }
  0x91   :  { %820 = vmatpush2.bf16.msra.mxu1 %v1311_v33 }
  0x92   :  { %821 = vmatprep.subr.bf16.mxu1 %v1316_v34 }
  0x95   :  { %822 = vmatpush2.bf16.msra.mxu1 %v1314_v35 }
  0xfc   :  { %v288_v41 = vpop.f32.mrf.mxu1 }
  0xfd   :  { %v289_v48 = vadd.f32 %v288_v41, %v90_v43 }
  0xfe   :  { %v290_v44 = vpop.f32.mrf.mxu1 }
  0xff   :  { %v291_v46 = vadd.f32 %v290_v44, %v94_v42  ;;  %v340_v54 = vmax.f32 %v289_v48, 0.0 }
 0x100   :  { %v292_v45 = vpop.f32.mrf.mxu1 }
 0x101   :  { %v293_v47 = vadd.f32 %v292_v45, %v90_v43  ;;  %v341_v52 = vmax.f32 %v291_v46, 0.0 }
 0x102   :  { %v294_v49 = vpop.f32.mrf.mxu1 }
 0x103   :  { %v295_v50 = vadd.f32 %v294_v49, %v94_v42  ;;  %v344_v51 = vmax.f32 %v293_v47, 0.0 }
 0x105   :  { %v345_v53 = vmax.f32 %v295_v50, 0.0  ;;  %v348_v56 = vpack.c.bf16 %v344_v51, %v340_v54 }
 0x107   :  { %v349_v55 = vpack.c.bf16 %v345_v53, %v341_v52  ;;  %v1132_v53 = vld [vmem:[%s1551_s6] ss:$0 sm:$0xff] }
 0x109   :  { %780 = vmatprep.mubr.bf16.mxu0 %v349_v55 }
 0x10a   :  { %781 = vmatmul.mubr.bf16.vlgmr.msra.gmra.mxu0 %v348_v56 }
 0x10b   :  { %1150 = vmatpush3.bf16.msra.mxu0 %v1318_v12 }
 0x10c   :  { %1151 = vmatprep.subr.bf16.mxu0 %v1319_v13 }
 0x10f   :  { %1152 = vmatpush3.bf16.msra.mxu0 %v1320_v14 }
 0x110   :  { %1153 = vmatprep.subr.bf16.mxu0 %v1321_v15 }
 0x113   :  { %1154 = vmatpush3.bf16.msra.mxu0 %v1322_v16 }
 0x114   :  { %1155 = vmatprep.subr.bf16.mxu0 %v1323_v17 }
 0x117   :  { %1156 = vmatpush3.bf16.msra.mxu0 %v1324_v18 }
 0x118   :  { %v331_v59 = vpop.f32.mrf.mxu1  ;;  %1157 = vmatprep.subr.bf16.mxu0 %v1325_v19 }
 0x119   :  { %v332_v2 = vadd.f32 %v331_v59, %v98_v61 }
 0x11a   :  { %v333_v62 = vpop.f32.mrf.mxu1 }
 0x11b   :  { %v334_v0 = vadd.f32 %v333_v62, %v102_v60  ;;  %v342_v8 = vmax.f32 %v332_v2, 0.0  ;;  %1158 = vmatpush3.bf16.msra.mxu0 %v1326_v20 }
 0x11c   :  { %v335_v63 = vpop.f32.mrf.mxu1  ;;  %1159 = vmatprep.subr.bf16.mxu0 %v1327_v21 }
 0x11d   :  { %v336_v1 = vadd.f32 %v335_v63, %v98_v61  ;;  %v343_v6 = vmax.f32 %v334_v0, 0.0 }
 0x11e   :  { %v337_v3 = vpop.f32.mrf.mxu1 }
 0x11f   :  { %v338_v4 = vadd.f32 %v337_v3, %v102_v60  ;;  %v346_v5 = vmax.f32 %v336_v1, 0.0  ;;  %1160 = vmatpush3.bf16.msra.mxu0 %v1328_v22 }
 0x120   :  { %1161 = vmatprep.subr.bf16.mxu0 %v1329_v23 }
 0x121   :  { %v347_v7 = vmax.f32 %v338_v4, 0.0  ;;  %v350_v10 = vpack.c.bf16 %v346_v5, %v342_v8 }
 0x123   :  { %v351_v9 = vpack.c.bf16 %v347_v7, %v343_v6  ;;  %1162 = vmatpush3.bf16.msra.mxu0 %v1330_v24 }
 0x124   :  { %1163 = vmatprep.subr.bf16.mxu0 %v1331_v25 }
 0x125   :  { %823 = vmatprep.mubr.bf16.mxu1 %v351_v9 }
 0x126   :  { %824 = vmatmul.mubr.bf16.vlgmr.msra.gmra.mxu1 %v350_v10 }
 0x127   :  { %1164 = vmatpush3.bf16.msra.mxu0 %v1332_v26 }
 0x1ca   :  { %v782_v27 = vpop.f32.mrf.mxu0 }
 0x1cb   :  { %v783_v41 = vadd.f32 %v782_v27, %v421_v32 }
 0x1cc   :  { %v784_v28 = vpop.f32.mrf.mxu0 }
 0x1cd   :  { %v785_v36 = vadd.f32 %v784_v28, %v425_v31 }
 0x1ce   :  { %v786_v30 = vpop.f32.mrf.mxu0 }
 0x1cf   :  { %v787_v39 = vadd.f32 %v786_v30, %v421_v32 }
 0x1d0   :  { %v788_v34 = vpop.f32.mrf.mxu0 }
 0x1d1   :  { %v789_v43 = vadd.f32 %v788_v34, %v425_v31 }
 0x1e6   :  { %v825_v33 = vpop.f32.mrf.mxu1 }
 0x1e7   :  { %v826_v46 = vadd.f32 %v825_v33, %v783_v41 }
 0x1e8   :  { %v827_v35 = vpop.f32.mrf.mxu1 }
 0x1e9   :  { %v828_v44 = vadd.f32 %v827_v35, %v785_v36  ;;  %v834_v38 = vmax.f32 %v826_v46, 0.0 }
 0x1ea   :  { %v829_v42 = vpop.f32.mrf.mxu1 }
 0x1eb   :  { %v830_v45 = vadd.f32 %v829_v42, %v787_v39  ;;  %v835_v50 = vmax.f32 %v828_v44, 0.0 }
 0x1ec   :  { %v831_v47 = vpop.f32.mrf.mxu1 }
 0x1ed   :  { %v832_v48 = vadd.f32 %v831_v47, %v789_v43  ;;  %v836_v49 = vmax.f32 %v830_v45, 0.0 }
 0x1ef   :  { %v837_v51 = vmax.f32 %v832_v48, 0.0  ;;  %v838_v37 = vpack.c.bf16 %v836_v49, %v834_v38 }
 0x1f1   :  { %v839_v52 = vpack.c.bf16 %v837_v51, %v835_v50 }
 0x1f3   :  { %1007 = vmatprep.mubr.bf16.mxu0 %v839_v52 }
 0x1f4   :  { %1008 = vmatmul.mubr.bf16.vlgmr.msra.gmra.mxu0 %v838_v37 }
 0x2b4   :  { %v1165_v40 = vpop.f32.mrf.mxu0 }
 0x2b6   :  { %v1166_v54 = vpop.f32.mrf.mxu0 }
 0x2b7   :  { %v1167_v55 = vadd.f32 %v1166_v54, %v1165_v40 }
 0x2b8   :  { %v1168_v56 = vpop.f32.mrf.mxu0 }
 0x2b9   :  { %v1010_v57 = vadd.f32 %v1167_v55, %v1132_v53 }
 0x2ba   :  { %v1169_v58 = vpop.f32.mrf.mxu0 }
 0x2bb   :  { %1016 = vst [vmem:[#allocation7] sm:$0xff] %v1010_v57  ;;  %v1170_v59 = vadd.f32 %v1169_v58, %v1168_v56 }
 0x2bd   :  { %v1013_v60 = vadd.f32 %v1170_v59, %v1132_v53 }
 0x2bf   :  { %1017 = vst [vmem:[#allocation7 + $0x8] sm:$0xff] %v1013_v60 }
 0x2c0   :  { %1022 = vsyncadd [#allocation4], 224  ;;  %s1406_s24 = smov [#allocation7]  }
 0x2c1   :  { %s1023_s25 = sshll.u32 %s1406_s24, 4  ;;  %s1024_s25 = int_to_ptr.vmem [resolvable:$true] %s1023_s25 }
 0x2c2   :  { %s1373_s26 = scalar_lea.vmem %s1024_s25, 32  ;;  %s1377_s27 = scalar_lea.vmem %s1024_s25, 256 }
 0x2c3   :  { %p1374_p10 = scmp.ne.s32.totalorder %s1024_s25, %s1373_s26  ;;  %p1378_p11 = scmp.lt.s32.totalorder %s1024_s25, %s1024_s25 }
 0x2c4   :  { %p1379_p12 = scmp.lt.s32.totalorder %s1377_s27, %s1373_s26 }
 0x2c6   :  { %p1380_p13 = por %p1379_p12, %p1378_p11 }
 0x2c8   :  { %p1381_p0 = pnand %p1380_p13, %p1374_p10 }
 0x2ca   :  { %1384 = shalt.err (!%p1381_p0)
}
 0x2cb   :  { %s1407_s6 = smov 32   ;;  %s1408_s28 = smov 2  }
 0x2cc   :  { %1029 = dma.vmem_to_hbm [thread:$0]  %s1024_s25, 32, %s1552_s7, [#allocation4], %s1407_s6, %s1407_s6, %s1408_s28  }
 0x2cd   :  { %1397 = dma.done.wait [#allocation4], 256  }
 0x2ce   :  { %1398 = vsyncadd [#allocation4], 4294967040 }
 0x2cf   :  { %1033 = vsyncpa [#allocation3], 1 }
 0x2d0   :  { %1034 = vsyncpa [#allocation6], 1 }
 0x2d1   :  { %1035 = vsyncpa [#allocation4], 1 }

</bundles_post_ra>
